<compile_context>
chip_gen: v5e
topology: v5e:2x2
jax: 0.10.0
libtpu: 0.0.40
codegen_flags: <defaults>
</compile_context>

<pallas_src>
import functools
import math

import jax
import jax.numpy as jnp
import numpy as np
from jax.experimental import pallas as pl
from jax.experimental.pallas import tpu as pltpu


# ----------------------------------------------------------------------------
# Tunables (conservative so they fit every TPU generation).
# ----------------------------------------------------------------------------
_VMEM_BLOCK_BUDGET = 24 * 1024 * 1024   # budget for double-buffered blocks
_VMEM_LIMIT_BYTES = 48 * 1024 * 1024    # scoped VMEM limit handed to Mosaic
_KRON_BYTES_LIMIT = 16 * 1024 * 1024    # above this the fused interp matrix is too big


# ----------------------------------------------------------------------------
# Interpolation matrices (host-side numpy, cached per shape — no retracing).
# ----------------------------------------------------------------------------
def _interp_matrix_np(n_in: int, n_out: int) -> np.ndarray:
    """1-D linear interpolation matrix, align_corners=True, shape (n_out, n_in)."""
    m = np.zeros((n_out, n_in), np.float32)
    if n_out == 1 or n_in == 1:
        m[:, 0] = 1.0
        return m
    src = np.arange(n_out, dtype=np.float64) * (n_in - 1) / (n_out - 1)
    lo = np.clip(np.floor(src).astype(np.int64), 0, n_in - 1)
    hi = np.minimum(lo + 1, n_in - 1)
    w_hi = (src - lo).astype(np.float32)
    w_lo = 1.0 - w_hi
    rows = np.arange(n_out)
    np.add.at(m, (rows, lo), w_lo)
    np.add.at(m, (rows, hi), w_hi)
    return m


@functools.lru_cache(maxsize=None)
def _kron_interp_T_np(h: int, w: int) -> np.ndarray:
    """(H*W, 4*H*W) matrix M^T such that vec(up) = vec(x) @ M^T (row-major)."""
    wy = _interp_matrix_np(h, 2 * h)   # (2H, H)
    wx = _interp_matrix_np(w, 2 * w)   # (2W, W)
    return np.ascontiguousarray(np.kron(wy, wx).T)   # (H*W, 2H*2W)


# ----------------------------------------------------------------------------
# Kernels.
# ----------------------------------------------------------------------------
def _upsample_kernel(x_ref, m_ref, o_ref):
    # x_ref: (BC, H*W)   m_ref: (H*W, 4*H*W)   o_ref: (BC, 4*H*W)
    o_ref[...] = jnp.dot(
        x_ref[...].astype(jnp.float32), m_ref[...],
        preferred_element_type=jnp.float32).astype(o_ref.dtype)


def _make_fused_kernel(n_c2_blocks: int):
    """Fused upsample + channel-concat kernel.

    Grid = (N, n_c2_blocks + n_c1_blocks). Steps with cb < n_c2_blocks copy a
    skip-connection block; the remaining steps upsample an x1 block. The
    "unused" input's index_map is clamped, so its block stays resident instead
    of being re-fetched.
    """
    def kernel(x2_ref, x1_ref, m_ref, o_ref):
        cb = pl.program_id(1)

        @pl.when(cb < n_c2_blocks)
        def _copy_skip():
            o_ref[...] = x2_ref[...].astype(o_ref.dtype)

        @pl.when(cb >= n_c2_blocks)
        def _upsample():
            o_ref[0] = jnp.dot(
                x1_ref[0].astype(jnp.float32), m_ref[...],
                preferred_element_type=jnp.float32).astype(o_ref.dtype)

    return kernel


# ----------------------------------------------------------------------------
# Block-size selection helpers.
# ----------------------------------------------------------------------------
def _compiler_params(dimension_semantics):
    return pltpu.CompilerParams(dimension_semantics=dimension_semantics,
                                vmem_limit_bytes=_VMEM_LIMIT_BYTES)


def _pick_row_block(nc: int, per_row_bytes: int) -> int:
    """Rows (n*c slices) per grid step for the stand-alone upsample kernel."""
    cap = max(8, int(_VMEM_BLOCK_BUDGET // per_row_bytes) // 8 * 8)
    cap = min(cap, 512)
    if nc <= 8:
        return nc                       # block == full dim (always legal)
    # Keep >= 2 grid steps so both v7x TensorCores get work.
    half = max(8, (nc // 2) // 8 * 8)
    return max(8, min(cap, half))


def _pick_fused_bc(c1: int, c2: int, hw: int, h2w2: int, itemsize: int):
    """Channel block for the fused kernel: multiple of 8 dividing both C1, C2."""
    g = math.gcd(c1, c2)
    divs = sorted((d for d in range(1, g + 1) if g % d == 0 and d % 8 == 0),
                  reverse=True)
    if not divs:
        return None
    # x1 + x2 + out rows per channel, double-buffered.
    per_chan = 2 * (hw + 2 * h2w2) * itemsize
    for d in divs:
        if d * per_chan <= _VMEM_BLOCK_BUDGET:
            return d
    return divs[-1]


# ----------------------------------------------------------------------------
# Wrappers.
# ----------------------------------------------------------------------------
def bilinear_upsample_2x(x1: jnp.ndarray) -> jnp.ndarray:
    """x1: (N, C, H, W) -> (N, C, 2H, 2W), bilinear, align_corners=True."""
    n, c, h, w = x1.shape
    hw, h2w2 = h * w, 4 * h * w
    itemsize = jnp.dtype(x1.dtype).itemsize

    if hw * h2w2 * 4 > _KRON_BYTES_LIMIT:
        # TODO(synk): very large feature maps need a separable (two-matmul)
        # Pallas kernel; use plain XLA there for now.
        wy = jnp.asarray(_interp_matrix_np(h, 2 * h))
        wx = jnp.asarray(_interp_matrix_np(w, 2 * w))
        up = jnp.einsum('ah,nchw,bw->ncab', wy, x1.astype(jnp.float32), wx,
                        precision=jax.lax.Precision.HIGHEST)
        return up.astype(x1.dtype)

    m_t = jnp.asarray(_kron_interp_T_np(h, w))          # (H*W, 4*H*W)
    nc = n * c
    x_flat = x1.reshape(nc, hw)                          # lane-dense input

    per_row = 2 * (hw + h2w2) * itemsize                 # in + out rows, dbl-buffered
    bc = _pick_row_block(nc, per_row)
    grid = (pl.cdiv(nc, bc),)

    cost = pl.CostEstimate(
        flops=2 * nc * hw * h2w2,
        transcendentals=0,
        bytes_accessed=nc * (hw + h2w2) * itemsize + hw * h2w2 * 4)

    up_flat = pl.pallas_call(
        _upsample_kernel,
        out_shape=jax.ShapeDtypeStruct((nc, h2w2), x1.dtype),
        grid_spec=pltpu.PrefetchScalarGridSpec(
            num_scalar_prefetch=0,
            grid=grid,
            in_specs=[
                pl.BlockSpec((bc, hw), lambda b: (b, 0)),
                pl.BlockSpec((hw, h2w2), lambda b: (0, 0)),   # constant, held
            ],
            out_specs=pl.BlockSpec((bc, h2w2), lambda b: (b, 0)),
        ),
        compiler_params=_compiler_params(("parallel",)),
        cost_estimate=cost,
    )(x_flat, m_t)

    return up_flat.reshape(n, c, 2 * h, 2 * w)


def _fused_up_concat(x1: jnp.ndarray, x2: jnp.ndarray, bc: int) -> jnp.ndarray:
    """Fused [upsample(x1); concat with x2] when spatial sizes already match."""
    n, c1, h, w = x1.shape
    _, c2, h2, w2 = x2.shape
    hw, h2w2 = h * w, h2 * w2                      # h2w2 == 4*h*w here
    out_dtype = x2.dtype
    itemsize = jnp.dtype(out_dtype).itemsize

    m_t = jnp.asarray(_kron_interp_T_np(h, w))     # (H*W, 4*H*W)
    x1_3d = x1.reshape(n, c1, hw)
    x2_3d = x2.reshape(n, c2, h2w2)

    n_c1b = c1 // bc
    n_c2b = c2 // bc
    n_cb = n_c1b + n_c2b

    cost = pl.CostEstimate(
        flops=2 * n * c1 * hw * h2w2,
        transcendentals=0,
        bytes_accessed=(n * c1 * hw + n * c2 * h2w2
                        + n * (c1 + c2) * h2w2) * itemsize + hw * h2w2 * 4)

    out = pl.pallas_call(
        _make_fused_kernel(n_c2b),
        out_shape=jax.ShapeDtypeStruct((n, c1 + c2, h2w2), out_dtype),
        grid_spec=pltpu.PrefetchScalarGridSpec(
            num_scalar_prefetch=0,
            grid=(n, n_cb),
            in_specs=[
                # Skip connection x2: real block while copying, clamped (and
                # therefore held resident, not re-fetched) afterwards.
                pl.BlockSpec((1, bc, h2w2),
                             lambda b, cb: (b, jnp.minimum(cb, n_c2b - 1), 0)),
                # Low-res x1: clamped to block 0 during the copy phase.
                pl.BlockSpec((1, bc, hw),
                             lambda b, cb: (b, jnp.clip(cb - n_c2b, 0, n_c1b - 1), 0)),
                # Fused interpolation matrix: constant block, fetched once.
                pl.BlockSpec((hw, h2w2), lambda b, cb: (0, 0)),
            ],
            out_specs=pl.BlockSpec((1, bc, h2w2), lambda b, cb: (b, cb, 0)),
        ),
        compiler_params=_compiler_params(("parallel", "parallel")),
        cost_estimate=cost,
    )(x2_3d, x1_3d, m_t)

    return out.reshape(n, c1 + c2, h2, w2)


def deepsea_up(x1: jnp.ndarray, x2: jnp.ndarray) -> jnp.ndarray:
    """Forward pass of DeepSeaUp(in_channels, bilinear=True).

    x1: (N, C1, H, W)   -> bilinearly upsampled 2x, padded/cropped to x2's HxW
    x2: (N, C2, H2, W2)
    returns: (N, C2 + C1, H2, W2)   (concat order [x2, x1_up], as in torch.cat)
    """
    n, c1, h, w = x1.shape
    n2, c2, h2, w2 = x2.shape
    assert n == n2, "batch dims must match"
    hw, h2w2 = h * w, 4 * h * w
    itemsize = jnp.dtype(x2.dtype).itemsize

    diff_y = h2 - 2 * h
    diff_x = w2 - 2 * w

    kron_ok = hw * h2w2 * 4 <= _KRON_BYTES_LIMIT
    bc = _pick_fused_bc(c1, c2, hw, h2w2, itemsize) if kron_ok else None

    if diff_y == 0 and diff_x == 0 and bc is not None:
        # Common UNet case: sizes already match -> one pallas_call does the
        # upsample AND the channel concat (no extra HBM pass for x1_up).
        return _fused_up_concat(x1.astype(x2.dtype), x2, bc)

    # General case: upsample kernel, then F.pad-style pad/crop + concat in XLA.
    x1_up = bilinear_upsample_2x(x1).astype(x2.dtype)
    pad_cfg = (
        (0, 0, 0),
        (0, 0, 0),
        (diff_y // 2, diff_y - diff_y // 2, 0),
        (diff_x // 2, diff_x - diff_x // 2, 0),
    )
    x1_up = jax.lax.pad(x1_up, jnp.array(0.0, x1_up.dtype), pad_cfg)
    return jnp.concatenate([x2, x1_up], axis=1)


# ----------------------------------------------------------------------------
# Demo / self-test.
# ----------------------------------------------------------------------------
if __name__ == "__main__":
    key = jax.random.PRNGKey(0)
    k1, k2, k3, k4 = jax.random.split(key, 4)

    def reference(x1, x2):
        _, _, h, w = x1.shape
        wy = jnp.asarray(_interp_matrix_np(h, 2 * h))
        wx = jnp.asarray(_interp_matrix_np(w, 2 * w))
        up = jnp.einsum('ah,nchw,bw->ncab', wy, x1.astype(jnp.float32), wx,
                        precision=jax.lax.Precision.HIGHEST).astype(x2.dtype)
        dy = x2.shape[2] - up.shape[2]
        dx = x2.shape[3] - up.shape[3]
        up = jax.lax.pad(up, jnp.array(0.0, up.dtype),
                         ((0, 0, 0), (0, 0, 0),
                          (dy // 2, dy - dy // 2, 0),
                          (dx // 2, dx - dx // 2, 0)))
        return jnp.concatenate([x2, up], axis=1)

    # Case A: matching spatial sizes -> fused upsample+concat Pallas kernel.
    n, c, h, w = 2, 8, 8, 8
    x1a = jax.random.normal(k1, (n, c, h, w), dtype=jnp.float32)
    x2a = jax.random.normal(k2, (n, c, 2 * h, 2 * w), dtype=jnp.float32)
    out_a = jax.block_until_ready(deepsea_up(x1a, x2a))
    assert out_a.shape == (n, 2 * c, 2 * h, 2 * w)
    assert jnp.allclose(out_a, reference(x1a, x2a), atol=1e-4, rtol=1e-4)

    # Case B: skip connection slightly larger -> upsample kernel + pad + concat.
    x1b = jax.random.normal(k3, (n, 4, h, w), dtype=jnp.float32)
    x2b = jax.random.normal(k4, (n, 6, 2 * h + 2, 2 * w + 1), dtype=jnp.float32)
    out_b = jax.block_until_ready(deepsea_up(x1b, x2b))
    assert out_b.shape == (n, 10, 2 * h + 2, 2 * w + 1)
    assert jnp.allclose(out_b, reference(x1b, x2b), atol=1e-4, rtol=1e-4)

    print("KERNEL_OK")
</pallas_src>

<mosaic_0001>
module attributes {stable_mosaic.version = 11 : i64} {
  func.func @kernel(%arg0: i32, %arg1: i32, %arg2: memref<1x8x256xf32, #tpu.memory_space<vmem>>, %arg3: memref<1x8x64xf32, #tpu.memory_space<vmem>>, %arg4: memref<64x256xf32, #tpu.memory_space<vmem>>, %arg5: memref<1x8x256xf32, #tpu.memory_space<vmem>>) attributes {dimension_semantics = [#tpu.dimension_semantics<parallel>, #tpu.dimension_semantics<parallel>], iteration_bounds = array<i64: 2, 2>, scalar_prefetch = 0 : i64, scratch_operands = 0 : i64, tpu.core_type = #tpu.core_type<tc>, window_params = [{transform_indices = @transform_0, window_bounds = array<i64: 1, 8, 256>}, {transform_indices = @transform_1, window_bounds = array<i64: 1, 8, 64>}, {pipeline_mode = #tpu.pipeline_mode<synchronous>, transform_indices = @transform_2, window_bounds = array<i64: 64, 256>}, {transform_indices = @transform_3, window_bounds = array<i64: 1, 8, 256>}]} {
    %c1_i32 = arith.constant 1 : i32
    %0 = arith.cmpi slt, %arg1, %c1_i32 : i32
    %1 = arith.extui %0 : i1 to i32
    %c0_i32 = arith.constant 0 : i32
    %2 = arith.cmpi ne, %1, %c0_i32 : i32
    scf.if %2 {
      %c0 = arith.constant 0 : index
      %c0_2 = arith.constant 0 : index
      %c0_3 = arith.constant 0 : index
      %6 = vector.load %arg2[%c0, %c0_2, %c0_3] : memref<1x8x256xf32, #tpu.memory_space<vmem>>, vector<1x8x256xf32>
      %c0_4 = arith.constant 0 : index
      %c0_5 = arith.constant 0 : index
      %c0_6 = arith.constant 0 : index
      %7 = vector.load %arg5[%c0_4, %c0_5, %c0_6] : memref<1x8x256xf32, #tpu.memory_space<vmem>>, vector<1x8x256xf32>
      tpu.vector_store %arg5[%c0_4, %c0_5, %c0_6], %6 {strides = array<i32>} : memref<1x8x256xf32, #tpu.memory_space<vmem>>, vector<1x8x256xf32>,
    } else {
    }
    %c1_i32_0 = arith.constant 1 : i32
    %3 = arith.cmpi sge, %arg1, %c1_i32_0 : i32
    %4 = arith.extui %3 : i1 to i32
    %c0_i32_1 = arith.constant 0 : i32
    %5 = arith.cmpi ne, %4, %c0_i32_1 : i32
    scf.if %5 {
      %c0 = arith.constant 0 : index
      %c0_2 = arith.constant 0 : index
      %c0_3 = arith.constant 0 : index
      %6 = vector.load %arg3[%c0, %c0_2, %c0_3] : memref<1x8x64xf32, #tpu.memory_space<vmem>>, vector<1x8x64xf32>
      %7 = vector.shape_cast %6 : vector<1x8x64xf32> to vector<8x64xf32>
      %c0_4 = arith.constant 0 : index
      %c0_5 = arith.constant 0 : index
      %8 = vector.load %arg4[%c0_4, %c0_5] : memref<64x256xf32, #tpu.memory_space<vmem>>, vector<64x256xf32>
      %cst = arith.constant dense<0.000000e+00> : vector<8x256xf32>
      %9 = tpu.matmul %7, %8, %cst {dimension_numbers = #tpu.dot_dimension_numbers<[1], [0], [0], [1], [0, 0, 1, 1], [], []>} : vector<8x64xf32>, vector<64x256xf32>, vector<8x256xf32> -> vector<8x256xf32>
      %c0_6 = arith.constant 0 : index
      %c0_7 = arith.constant 0 : index
      %c0_8 = arith.constant 0 : index
      %10 = vector.load %arg5[%c0_6, %c0_7, %c0_8] : memref<1x8x256xf32, #tpu.memory_space<vmem>>, vector<1x8x256xf32>
      %11 = vector.shape_cast %10 : vector<1x8x256xf32> to vector<8x256xf32>
      %12 = vector.shape_cast %9 : vector<8x256xf32> to vector<1x8x256xf32>
      tpu.vector_store %arg5[%c0_6, %c0_7, %c0_8], %12 {strides = array<i32>} : memref<1x8x256xf32, #tpu.memory_space<vmem>>, vector<1x8x256xf32>,
    } else {
    }
    return
  }
  func.func @transform_0(%arg0: i32, %arg1: i32) -> (i32, i32, i32) {
    %c0_i32 = arith.constant 0 : i32
    %0 = arith.minsi %arg1, %c0_i32 : i32
    %c0_i32_0 = arith.constant 0 : i32
    %c0_i32_1 = arith.constant 0 : i32
    return %arg0, %0, %c0_i32_0 : i32, i32, i32
  }
  func.func @transform_1(%arg0: i32, %arg1: i32) -> (i32, i32, i32) {
    %c1_i32 = arith.constant 1 : i32
    %0 = arith.subi %arg1, %c1_i32 : i32
    %c0_i32 = arith.constant 0 : i32
    %c0_i32_0 = arith.constant 0 : i32
    %1 = arith.maxsi %c0_i32, %0 : i32
    %2 = arith.minsi %c0_i32_0, %1 : i32
    %c0_i32_1 = arith.constant 0 : i32
    %c0_i32_2 = arith.constant 0 : i32
    return %arg0, %2, %c0_i32_1 : i32, i32, i32
  }
  func.func @transform_2(%arg0: i32, %arg1: i32) -> (i32, i32) {
    %c0_i32 = arith.constant 0 : i32
    %c0_i32_0 = arith.constant 0 : i32
    %c0_i32_1 = arith.constant 0 : i32
    return %c0_i32, %c0_i32_0 : i32, i32
  }
  func.func @transform_3(%arg0: i32, %arg1: i32) -> (i32, i32, i32) {
    %c0_i32 = arith.constant 0 : i32
    %c0_i32_0 = arith.constant 0 : i32
    return %arg0, %arg1, %c0_i32 : i32, i32, i32
  }
}

</mosaic_0001>

<bundles_post_ra>
// kernel: tpu_custom_call.1
= control target key start
LH: loop header
LB: loop body
LE: loop exit
PB: predicated region body
PF: predicated region fallthrough
CT: control target
= control target key end

     0   :  { %s1260_s0 = inlined_call_operand.hbm [shape: f32[2,8,256], index: 0, kind: input, shape index: {}]   ;;  %s1261_s1 = inlined_call_operand.hbm [shape: f32[2,8,64], index: 1, kind: input, shape index: {}]   ;;  %s1262_s2 = inlined_call_operand.hbm [shape: f32[64,256], index: 2, kind: input, shape index: {}]   ;;  %s1263_s3 = inlined_call_operand.hbm [shape: f32[2,16,256], index: 3, kind: output, shape index: {}]  }
   0x1   :  { %1271 = sst [smem:[#allocation20_spill]] %s1260_s0 }
   0x2   :  { %1272 = sst [smem:[#allocation21_spill]] %s1262_s2 }
   0x3   :  { %1273 = sst [smem:[#allocation22_spill]] %s1263_s3 }
   0x4   :  { %8 = vsyncpa [#allocation3], 0 }
   0x5   :  { %10 = vsyncpa [#allocation3 + $0x1], 0 }
   0x6   :  { %11 = vsyncpa [#allocation6], 0 }
   0x7   :  { %13 = vsyncpa [#allocation6 + $0x1], 0 }
   0x8   :  { %14 = vsyncpa [#allocation4], 0 }
   0x9   :  { %16 = vsyncpa [#allocation4 + $0x1], 0  ;;  %s965_s12 = smov 0   ;;  %s967_s13 = smov 0  }
   0xa   :  { %s969_s14 = smov 0   ;;  %s971_s15 = smov 0  }
   0xb   :  { %s973_s16 = smov 0   ;;  %s975_s17 = smov 0  }
   0xc   :  { %s977_s18 = smov 0   ;;  %s979_s19 = smov 0  }
   0xd   :  { %s981_s20 = smov 0   ;;  %s983_s21 = smov 0  }
   0xe   :  { %s985_s22 = smov 0   ;;  %s987_s23 = smov 0  }
   0xf   :  { %s989_s24 = smov 0   ;;  %s991_s25 = smov 0  }
  0x10 LB: > { %1274 = sst [smem:[#allocation13_spill]] %s888_s12  ;;  %s1036_s26 = sadd.s32 4294967295, %s940_s25   ;;  %s940_s25 = sphi %s991_s25, %s22_s25   ;;  %s936_s24 = sphi %s989_s24, %s1310_s24   ;;  %s932_s23 = sphi %s987_s23, %s1298_s23   ;;  %s928_s22 = sphi %s985_s22, %s1309_s22   ;;  %s924_s21 = sphi %s983_s21, %s1297_s21   ;;  %s920_s20 = sphi %s981_s20, %s1308_s20   ;;  %s916_s19 = sphi %s979_s19, %s1307_s19   ;;  %s912_s18 = sphi %s977_s18, %s1306_s18   ;;  %s908_s17 = sphi %s975_s17, %s1305_s17   ;;  %s904_s16 = sphi %s973_s16, %s1304_s16   ;;  %s900_s15 = sphi %s971_s15, %s1303_s15   ;;  %s896_s14 = sphi %s969_s14, %s1302_s14   ;;  %s892_s13 = sphi %s967_s13, %s1301_s13   ;;  %s888_s12 = sphi %s965_s12, %s1300_s12  }
  0x11   : > { %1275 = sst [smem:[#allocation14_spill]] %s920_s20  ;;  %p521_p0 = scmp.ge.s32.totalorder %s940_s25, 1 }
  0x12   : > { %1276 = sst [smem:[#allocation15_spill]] %s932_s23  ;;  %p61_p1 = scmp.eq.s32.totalorder %s1036_s26, 0 }
  0x13   : > { %p145_p2 = scmp.eq.s32.totalorder %s1036_s26, 3  ;;  %p158_p3 = scmp.lt.s32.totalorder %s940_s25, 5 }
  0x14   : > { %s1277_s2 = sld [smem:[#allocation21_spill]]  ;;  %s942_s4 = smov [#allocation7]  }
  0x15   : > { %p1045_p4 = pnand %p521_p0, %p158_p3  ;;  %s171_s5 = sshll.u32 %s942_s4, 4  ;;  %s172_s5 = int_to_ptr.vmem [resolvable:$true] %s171_s5 }
  0x16   : > { %s943_s6 = smov 256   ;;  %s944_s7 = smov 16  }
  0x17   : > { %p561_p5 = pneg %p1045_p4  ;;  %s508_s8 = sadd.s32 4294967294, %s940_s25  }
  0x18   : > { %s31_s9 = sadd.s32 1, %s932_s23  ;;  %s34_s10 = sadd.s32 1, %s936_s24 }
  0x19   : > { %p562_p6 = pnand %p561_p5, %p61_p1  ;;  %p32_p7 = scmp.ge.s32.totalorder %s31_s9, 2 }
  0x1a   : > { %s169_s29 = sshll.u32 %s1277_s2, 4  ;;  %s47_s11 = sadd.s32 1, %s920_s20  ;;  %s170_s29 = int_to_ptr.hbm [resolvable:$true] %s169_s29 }
  0x1b   : > { %564 = dma.hbm_to_vmem [thread:$0]  (!%p562_p6), %s170_s29, 2048, %s172_s5, [#allocation6], %s943_s6, %s943_s6, %s944_s7  }
  0x1c   : > { %s1312_s9 = smov (%p32_p7, %s31_s9), 0  ;;  %s1314_s10 = smov (!%p32_p7, %s34_s10), %s936_s24 }
  0x1d   : > { %1279 = sst [smem:[#allocation16_spill]] %s1312_s9  ;;  %p36_p8 = scmp.ge.s32.totalorder %s1314_s10, 2 }
  0x1e   : > { %p54_p9 = scmp.ne.s32.totalorder %s920_s20, %s916_s19  ;;  %p55_p10 = scmp.eq.s32.totalorder %s940_s25, 0 }
  0x1f   : > { %s1316_s10 = smov (%p36_p8, %s1314_s10), 0  ;;  %p60_p12 = scmp.ne.s32.totalorder %s916_s19, %s912_s18 }
  0x20   : > { %1280 = sst [smem:[#allocation17_spill]] %s1316_s10  ;;  %s1067_s27 = ssub.s32 %s936_s24, %s1316_s10 }
  0x21   : > { %p1071_p11 = por %p55_p10, %p54_p9  ;;  %p83_p13 = scmp.eq.s32.totalorder %s1067_s27, 0 }
  0x22   : > { %p1080_p0 = por %p61_p1, %p60_p12  ;;  %s130_s4 = ssub.s32 %s932_s23, %s1312_s9 }
  0x23   : > { %s134_s5 = sadd.s32 1, %s896_s14  ;;  %s131_s7 = sor.u32 %s130_s4, %s1067_s27 }
  0x24   : > { %s1090_s6 = scalar_select %p83_p13, %s920_s20, %s47_s11  }
  0x25   : > { %p144_p3 = scmp.ne.s32.totalorder %s896_s14, %s892_s13  ;;  %p132_p5 = scmp.eq.s32.totalorder %s131_s7, 0 }
  0x26   : > { %1283 = sst [smem:[#allocation18_spill]] %s1090_s6  ;;  %p150_p6 = scmp.ne.s32.totalorder %s892_s13, %s888_s12 }
  0x27   : > { %p1099_p7 = por %p145_p2, %p144_p3  ;;  %p151_p8 = scmp.eq.s32.totalorder %s508_s8, 3 }
  0x28   : > { %s1104_s2 = scalar_select %p132_p5, %s896_s14, %s134_s5  }
  0x29   : > { %p1106_p9 = por %p151_p8, %p150_p6  ;;  %p1270_p12 = scmp.lt.s32.totalorder %s940_s25, 4 }
  0x2a   : > { %1285 = sst [smem:[#allocation19_spill]] %s1104_s2  ;;  %s185_s11 = sand.u32 1, %s920_s20  }
  0x2b   : > { %s524_s4 = sshll.u32 %s185_s11, 4  ;;  %s885_s6 = sshll.u32 %s936_s24, 4 }
  0x2c   : > { %s189_s9 = scalar_lea.vmem [#allocation2], %s524_s4  ;;  %s1287_s0 = sld [smem:[#allocation20_spill]] }
  0x2d   : > { %s202_s23 = sshll.u32 %s189_s9, 4  ;;  %p1120_p2 = pnand %p1270_p12, %p1071_p11  ;;  %s203_s23 = int_to_ptr.vmem [resolvable:$true] %s202_s23 }
  0x2e   : > { %s186_s2 = scalar_lea.sflag [#allocation3], %s185_s11 }
  0x2f   : > { %p729_p5 = pneg %p1120_p2 }
  0x32   : > { %s198_s3 = scalar_lea.hbm %s1287_s0, %s885_s6  ;;  %s732_s28 = scalar_lea.hbm %s1287_s0, 32 }
  0x33   : > { %s200_s5 = sshll.u32 %s198_s3, 4  ;;  %s201_s5 = int_to_ptr.hbm [resolvable:$true] %s200_s5 }
  0x34   : > { %s725_s20 = sshra.s32 %s201_s5, 4  ;;  %s726_s20 = int_to_ptr.hbm [resolvable:$true] %s725_s20 }
  0x35   : > { %s727_s4 = scalar_lea.hbm %s726_s20, 16 }
  0x36   : > { %p728_p3 = scmp.ne.s32.totalorder %s726_s20, %s727_s4  ;;  %p734_p11 = scmp.lt.s32.totalorder %s732_s28, %s727_s4 }
  0x38   : > { %p730_p6 = pnand %p729_p5, %p728_p3 }
  0x3a   : > { %p731_p8 = pneg %p730_p6 }
  0x3c   : > { %p736_p12 = pnand %p734_p11, %p731_p8 }
  0x3e   : > { %739 = shalt.err (!%p736_p12)
}
  0x3f   : > { %568 = dma.hbm_to_vmem [thread:$0]  (!%p1120_p2), %s201_s5, 256, %s203_s23, %s186_s2  }
  0x40   : > { %s85_s3 = sadd.s32 1, %s908_s17  ;;  %p92_p12 = scmp.ne.s32.totalorder %s908_s17, %s904_s16 }
  0x41   : > { %s1135_s20 = scalar_select %p83_p13, %s908_s17, %s85_s3  }
  0x42   : > { %p98_p3 = scmp.ne.s32.totalorder %s904_s16, %s900_s15  ;;  %s209_s6 = sand.u32 1, %s940_s25  }
  0x43   : > { %s211_s11 = sand.u32 1, %s908_s17   ;;  %p94_p5 = por %p92_p12, %p55_p10 }
  0x44   : > { %p1147_p6 = por %p98_p3, %p61_p1  ;;  %s528_s8 = sshll.u32 %s211_s11, 3 }
  0x45   : > { %s535_s4 = sshll.u32 %s936_s24, 3  ;;  %s213_s27 = scalar_lea.vmem [#allocation5], %s528_s8 }
  0x46   : > { %s223_s23 = scalar_lea.hbm %s1261_s1, %s535_s4  ;;  %s227_s5 = sshll.u32 %s213_s27, 4  ;;  %s228_s5 = int_to_ptr.vmem [resolvable:$true] %s227_s5 }
  0x47   : > { %s225_s9 = sshll.u32 %s223_s23, 4  ;;  %p1290_p13 = scmp.lt.s32.totalorder %s940_s25, 4  ;;  %s226_s9 = int_to_ptr.hbm [resolvable:$true] %s225_s9 }
  0x48   : > { %s210_s15 = scalar_lea.sflag [#allocation6], %s209_s6  ;;  %236 = sbr.rel (%p1045_p4) target bundleno = 267 (0x10b), region = 32 }
  0x49   : > { %p569_p2 = pnand %p1290_p13, %p94_p5  ;;  %s238_s28 = sand.u32 (!%p1045_p4), 1, %s916_s19  }
  0x4a   : > { %s537_s3 = sshll.u32 (!%p1045_p4), %s238_s28, 4  ;;  %s239_s11 = scalar_lea.sflag (!%p1045_p4), [#allocation3], %s238_s28 }
  0x4b   : > { %571 = dma.hbm_to_vmem [thread:$0]  (!%p569_p2), %s226_s9, 128, %s228_s5, %s210_s15  }
  0x4c   : > { %s242_s0 = scalar_lea.vmem (!%p1045_p4), [#allocation2], %s537_s3 }
  0x4d   : > { %870 = dma.done.wait (%p1080_p0), %s239_s11, 256  }
  0x4e   : > { %872 = vsyncadd (%p1080_p0), %s239_s11, 4294967040  ;;  %s248_s8 = sand.u32 1, %s1036_s26   ;;  %s250_s6 = sand.u32 1, %s904_s16  }
  0x4f   : > { %s1166_s4 = sshll.u32 %s250_s6, 3  ;;  %s249_s30 = scalar_lea.sflag [#allocation6], %s248_s8 }
  0x50   : > { %s252_s12 = scalar_lea.vmem [#allocation5], %s1166_s4 }
  0x51   : > { %874 = dma.done.wait (%p1147_p6), %s249_s30, 128  }
  0x52   : > { %876 = vsyncadd (%p1147_p6), %s249_s30, 4294967168 }
  0x53   : > { %878 = dma.done.wait (%p61_p1), [#allocation6], 2048  }
  0x54   : > { %880 = vsyncadd (%p61_p1), [#allocation6], 4294965248  ;;  %s283_s29 = sand.u32 1, %s892_s13   ;;  %p541_p4 = scmp.ge.s32.totalorder %s924_s21, 1 }
  0x55   : > { %s540_s2 = sshll.u32 %s283_s29, 4 }
  0x56   : > { %s1180_s23 = scalar_lea.vmem [#allocation8], %s540_s2  ;;  %296 = sbr.rel (%p541_p4) target bundleno = 94 (0x5e), region = 48 }
  0x5b   : > { %v297_v0 = vld [vmem:[%s242_s0] sm:$0xff]  ;;  %v298_v1 = vld [vmem:[%s242_s0 + $0x8] sm:$0xff] }
  0x5c   : > { %299 = vst [vmem:[%s1180_s23] sm:$0xff] %v297_v0 }
  0x5d   : > { %300 = vst [vmem:[%s1180_s23 + $0x8] sm:$0xff] %v298_v1 }
  0x5e PF: > { %p542_p10 = scmp.lt.s32.totalorder %s924_s21, 1 }
  0x60   : > { %304 = sbr.rel (%p542_p10) target bundleno = 245 (0xf5), region = 52 }
  0x65   : > { %v320_v2 = vld [vmem:[#allocation7 + $0x70] sm:$0xff]  ;;  %v321_v3 = vld [vmem:[#allocation7 + $0x78] sm:$0xff]  ;;  %v318_v4 = vld [vmem:[#allocation7 + $0x60] sm:$0xff]  ;;  %vm322_vm0 = vcmask 523264  }
  0x66   : > { %334 = vmatpush.msra.mxu0 %v320_v2  ;;  %354 = vmatpush.msra.mxu1 %v321_v3  ;;  %v319_v5 = vld [vmem:[#allocation7 + $0x68] sm:$0xff]  ;;  %v316_v6 = vld [vmem:[#allocation7 + $0x50] sm:$0xff]  ;;  %v317_v7 = vld [vmem:[#allocation7 + $0x58] sm:$0xff] }
  0x67   : > { %v314_v8 = vld [vmem:[#allocation7 + $0x40] sm:$0xff]  ;;  %v315_v9 = vld [vmem:[#allocation7 + $0x48] sm:$0xff]  ;;  %v312_v10 = vld [vmem:[#allocation7 + $0x30] sm:$0xff] }
  0x68   : > { %335 = vmatpush.msra.mxu0 %v318_v4  ;;  %355 = vmatpush.msra.mxu1 %v319_v5  ;;  %v313_v11 = vld [vmem:[#allocation7 + $0x38] sm:$0xff]  ;;  %v310_v12 = vld [vmem:[#allocation7 + $0x20] sm:$0xff]  ;;  %v311_v13 = vld [vmem:[#allocation7 + $0x28] sm:$0xff] }
  0x69   : > { %v308_v14 = vld [vmem:[#allocation7 + $0x10] sm:$0xff]  ;;  %v309_v15 = vld [vmem:[#allocation7 + $0x18] sm:$0xff]  ;;  %v306_v16 = vld [vmem:[#allocation7] sm:$0xff] }
  0x6a   : > { %336 = vmatpush.msra.mxu0 %v316_v6  ;;  %356 = vmatpush.msra.mxu1 %v317_v7  ;;  %v307_v17 = vld [vmem:[#allocation7 + $0x8] sm:$0xff]  ;;  %v305_v18 = vld [vmem:[%s252_s12] sm:$0xff] }
  0x6c   : > { %337 = vmatpush.msra.mxu0 %v314_v8  ;;  %357 = vmatpush.msra.mxu1 %v315_v9 }
  0x6e   : > { %338 = vmatpush.msra.mxu0 %v312_v10  ;;  %358 = vmatpush.msra.mxu1 %v313_v11 }
  0x70   : > { %339 = vmatpush.msra.mxu0 %v310_v12  ;;  %359 = vmatpush.msra.mxu1 %v311_v13 }
  0x72   : > { %340 = vmatpush.msra.mxu0 %v308_v14  ;;  %360 = vmatpush.msra.mxu1 %v309_v15 }
  0x74   : > { %341 = vmatpush.msra.mxu0 %v306_v16  ;;  %361 = vmatpush.msra.mxu1 %v307_v17 }
  0x75   : > { %543 = vmatmul.msk.f32.vlgmr.msra.gmra.mxu0 %vm322_vm0, %v305_v18  ;;  %544 = vmatmul.msk.f32.vlgmr.msra.gmra.mxu1 %vm322_vm0, %v305_v18 }
  0xf2   : > { %v343_v19 = vpop.f32.mrf.mxu0  ;;  %v363_v20 = vpop.f32.mrf.mxu1 }
  0xf3   : > { %366 = vst [vmem:[%s1180_s23] sm:$0xff] %v343_v19 }
  0xf4   : > { %367 = vst [vmem:[%s1180_s23 + $0x8] sm:$0xff] %v363_v20 }
  0xf5 PF: > { %s546_s0 = sshll.u32 %s924_s21, 1  ;;  %s547_s26 = sshll.u32 %s928_s22, 2 }
  0xf6   : > { %s384_s7 = sshll.u32 %s1180_s23, 4  ;;  %s380_s27 = sadd.s32 %s547_s26, %s546_s0  ;;  %s385_s7 = int_to_ptr.vmem [resolvable:$true] %s384_s7 }
  0xf7   : > { %s548_s5 = sshll.u32 %s380_s27, 3  ;;  %s1291_s28 = sld [smem:[#allocation22_spill]] }
  0xf8   : > { %s369_s8 = scalar_lea.sflag [#allocation4], %s283_s29 }
  0xfd   : > { %s382_s3 = scalar_lea.hbm %s1291_s28, %s548_s5  ;;  %s805_s30 = scalar_lea.hbm %s1291_s28, 64 }
  0xfe   : > { %s386_s11 = sshll.u32 %s382_s3, 4  ;;  %s387_s11 = int_to_ptr.hbm [resolvable:$true] %s386_s11 }
  0xff   : > { %s799_s6 = sshra.s32 %s387_s11, 4  ;;  %s800_s6 = int_to_ptr.hbm [resolvable:$true] %s799_s6 }
 0x100   : > { %s801_s4 = scalar_lea.hbm %s800_s6, 16  ;;  %p806_p11 = scmp.lt.s32.totalorder %s800_s6, %s1291_s28 }
 0x101   : > { %p802_p1 = scmp.ne.s32.totalorder %s800_s6, %s801_s4  ;;  %p807_p12 = scmp.lt.s32.totalorder %s805_s30, %s801_s4 }
 0x103   : > { %p803_p0 = pnand %p802_p1, %p1099_p7  ;;  %p808_p3 = por %p807_p12, %p806_p11 }
 0x105   : > { %p804_p8 = pneg %p803_p0 }
 0x107   : > { %p809_p5 = pnand %p808_p3, %p804_p8 }
 0x109   : > { %812 = shalt.err (!%p809_p5)
}
 0x10a   : > { %559 = dma.vmem_to_hbm [thread:$0]  (%p1099_p7), %s385_s7, 256, %s387_s11, %s369_s8  }
 0x10b PF: > { %s1292_s29 = sld [smem:[#allocation13_spill]]  ;;  %p579_p6 = scmp.ge.s32.totalorder %s940_s25, 2 }
 0x10d   : > { %p573_p13 = pnand %p579_p6, %p1106_p9 }
 0x10f   : > { %p574_p2 = pneg %p573_p13 }
 0x111   : > { %s398_s23 = sand.u32 1, %s1292_s29  }
 0x112   : > { %s399_s0 = scalar_lea.sflag [#allocation4], %s398_s23 }
 0x113   : > { %882 = dma.done.wait (%p574_p2), %s399_s0, 256  }
 0x114   : > { %884 = vsyncadd (%p574_p2), %s399_s0, 4294967040  ;;  %s22_s25 = sadd.s32 1, %s940_s25   ;;  %s1294_s18 = sld [smem:[#allocation19_spill]] }
 0x115   : > { %p1213_p4 = scmp.ge.s32.totalorder %s22_s25, 6   ;;  %s1295_s7 = sld [smem:[#allocation14_spill]] }
 0x116   : > { %s1296_s10 = sld [smem:[#allocation18_spill]]  ;;  %s1300_s12 = smov %s892_s13 }
 0x117   : > { %s1297_s21 = sld [smem:[#allocation15_spill]]  ;;  %s1301_s13 = smov %s896_s14 }
 0x118   : > { %s1298_s23 = sld [smem:[#allocation16_spill]]  ;;  %s1303_s15 = smov %s904_s16 }
 0x119   : > { %s1299_s27 = sld [smem:[#allocation17_spill]]  ;;  %s1304_s16 = smov %s908_s17 }
 0x11a   : > { %s1302_s14 = smov %s1294_s18  ;;  %s1305_s17 = smov %s1135_s20 }
 0x11b   : > { %s1306_s18 = smov %s916_s19  ;;  %s1307_s19 = smov %s1295_s7 }
 0x11c   : > { %s1308_s20 = smov %s1296_s10  ;;  %s1309_s22 = smov %s936_s24 }
 0x11d   :  { %21 = sbr.rel (!%p1213_p4) target bundleno = 16 (0x10), region = 102 }
 0x11f   : > { %s1310_s24 = smov %s1299_s27 }
 0x122   :  { %405 = vsyncpa [#allocation3], 1 }
 0x123   :  { %407 = vsyncpa [#allocation3 + $0x1], 1 }
 0x124   :  { %408 = vsyncpa [#allocation6], 1 }
 0x125   :  { %410 = vsyncpa [#allocation6 + $0x1], 1 }
 0x126   :  { %411 = vsyncpa [#allocation4], 1 }
 0x127   :  { %413 = vsyncpa [#allocation4 + $0x1], 1 }

</bundles_post_ra>
